<compile_context>
chip_gen: v6e
topology: v6e:2x2x1
jax: 0.10.0
libtpu: 0.0.40
codegen_flags: <defaults>
</compile_context>

<pallas_src>
import math
import numpy as np
import jax
import jax.numpy as jnp
from jax.experimental import pallas as pl
from jax.experimental.pallas import tpu as pltpu

F32 = jnp.float32

# On v6e / v7x at realistic N set to jnp.bfloat16 so the [K+1, N, 2N] L stream
# lives in HBM as bf16 (halves HBM traffic, doubles MXU rate); accumulation
# stays f32 via preferred_element_type.  f32 here for exact reference parity.
L_DTYPE = jnp.float32


def _vmem_limit_bytes():
    try:
        cap = int(pltpu.get_tpu_info().vmem_capacity_bytes)
    except Exception:
        cap = 64 * 1024 * 1024        # conservative fallback (v7x physical)
    # ~80% of physical: ~51 MiB on v7x, ~102 MiB on v5e/v6e — headroom for
    # compiler-internal scratch + double buffers.
    return int(cap * 0.8)


def _mm(a, b):
    return jnp.dot(a, b, preferred_element_type=F32)


def _resident(shape):
    """Full-array block, resident across the (trivial) grid."""
    n = len(shape)
    return pl.BlockSpec(shape, lambda *args, _n=n: (0,) * _n)


# ----------------------------- fused per-layer kernel -----------------------------

def _make_layer_kernel(Kp1, in_c, f, S, P, out_c, N, M):
    # TODO(synk): for len(multihopCov) > 1 the original torch code's flat
    # .view(2, N, -1) on the stacked long branch scrambles scale/real-imag/node
    # indices (and then shape-errors at the W01 residual add); this kernel
    # implements the S == 1 case, the only configuration the module actually runs.
    sf = S * f

    def kernel(x_ref, lt_ref, wlin_ref, qpk_ref, wbrt_ref, dexp_ref, qtp_ref,
               b_ref, y_ref):
        x = x_ref[...]                                       # [2*in_c, N] = [Xr^T ; Xi^T]

        # ---- one lane-dense matmul for ALL X@W work (Chebyshev + W01 residual)
        xw = _mm(wlin_ref[...], x)                           # [(K+1)*2f + 2*out_c, N]

        # ---- Chebyshev sum: one MXU pass over packed [Lr_k^T | Li_k^T] per k.
        #      (K+1) is tiny & static -> fully unrolled, accumulators live in vregs.
        acc_r = None
        acc_i = None
        for k in range(Kp1):
            blk = xw[2 * f * k:2 * f * (k + 1), :]           # [2f, N] = [xrw_k ; xiw_k]
            lt = lt_ref[k]                                   # [N, 2N]
            r = jnp.dot(blk.astype(lt.dtype), lt, preferred_element_type=F32)
            r1 = r[:, :N]                                    # blk @ Lr_k^T
            r2 = r[:, N:]                                    # blk @ Li_k^T
            tr = r1[:f] - r2[f:]                             # (Lr Xr Wk - Li Xi Wk)^T
            ti = r2[:f] + r1[f:]                             # (Li Xr Wk + Lr Xi Wk)^T
            acc_r = tr if acc_r is None else acc_r + tr
            acc_i = ti if acc_i is None else acc_i + ti

        # ---- long + res branches in Q-space (never dense [N, N])
        g = _mm(x, qpk_ref[...])                             # [2*in_c, 2M]
        At = g[:in_c, :M] + g[in_c:, M:]                     # (Qr^T Xr + Qi^T Xi)^T
        Bt = g[:in_c, M:] - g[in_c:, :M]                     # (Qi^T Xr - Qr^T Xi)^T
        wbrt = wbrt_ref[...]                                 # [Ftot, in_c] packed branch W^T
        dexp = dexp_ref[...]                                 # [Ftot, M] scales (1/P folded in)
        c1 = dexp * _mm(wbrt, At)                            # [Ftot, M]
        c2 = dexp * _mm(wbrt, Bt)

        # sum the P res coefficient blocks in M-space before back-projecting
        c1_res = c1[sf:sf + out_c]
        c2_res = c2[sf:sf + out_c]
        for p in range(1, P):
            lo = sf + p * out_c
            c1_res = c1_res + c1[lo:lo + out_c]
            c2_res = c2_res + c2[lo:lo + out_c]
        cc = jnp.concatenate(
            [jnp.concatenate([c1[:sf], c1_res], axis=0),
             jnp.concatenate([c2[:sf], c2_res], axis=0)], axis=-1)   # [sf+out_c, 2M]

        qtp = qtp_ref[...]                                   # [4M, N] = [Qr^T;Qi^T;Qi^T;-Qr^T]
        proj_r = _mm(cc, qtp[:2 * M])                        # [sf+out_c, N] (lane-dense)
        proj_i = _mm(cc, qtp[2 * M:])

        # ---- assemble + W01 residual + bias + complex ReLU; store packed [2*out_c, N]
        base = Kp1 * 2 * f
        bias = b_ref[...]                                    # [out_c, 1] lane-broadcast
        y_r = (jnp.concatenate([acc_r, proj_r[:sf]], axis=0)
               + xw[base:base + out_c] + proj_r[sf:] + bias)
        y_i = (jnp.concatenate([acc_i, proj_i[:sf]], axis=0)
               + xw[base + out_c:base + 2 * out_c] + proj_i[sf:] + bias)
        mask = (y_r >= 0.0).astype(F32)
        y_ref[...] = jnp.concatenate([mask * y_r, mask * y_i], axis=0)

    return kernel


def pallas_cagn_conv_layer(Lt_pack, lp, X_t, Qpack, QTpack, T_long, T_res):
    Kp1, N, _ = Lt_pack.shape
    Wc = lp["weight"]            # [K+1, in_c, f]
    Wl = lp["weight_long"]       # [S,   in_c, f]
    Wres = lp["weight_res"]      # [P,   in_c, out_c]
    bias = lp["bias"]            # [1, out_c]
    in_c = Wc.shape[1]
    f = Wc.shape[-1]
    S = Wl.shape[0]
    P = Wres.shape[0]
    out_c = Wres.shape[-1]
    M = T_long.shape[0]

    # ---- weight / scale packing (tiny, plain JAX in the wrapper) ----
    # W_lin rows: per k, [W_k^T | 0] (-> xrw_k) then [0 | W_k^T] (-> xiw_k);
    # then [W01^T | 0] and [0 | W01^T] for the X @ cat(W0, W1) residual.
    WcT = jnp.transpose(Wc, (0, 2, 1))                        # [K+1, f, in_c]
    zf = jnp.zeros((f, in_c), F32)
    rows = []
    for k in range(Kp1):
        rows.append(jnp.concatenate([WcT[k], zf], axis=-1))
        rows.append(jnp.concatenate([zf, WcT[k]], axis=-1))
    w01t = jnp.concatenate([Wc[0], Wc[1]], axis=-1).T         # [out_c, in_c]
    zo = jnp.zeros((out_c, in_c), F32)
    rows.append(jnp.concatenate([w01t, zo], axis=-1))
    rows.append(jnp.concatenate([zo, w01t], axis=-1))
    W_lin = jnp.concatenate(rows, axis=0)                     # [(K+1)*2f + 2*out_c, 2*in_c]

    # Packed branch weights (long blocks then res blocks) and matching scales.
    W_brT = jnp.concatenate(
        [jnp.transpose(Wl, (0, 2, 1)).reshape(S * f, in_c),
         jnp.transpose(Wres, (0, 2, 1)).reshape(P * out_c, in_c)], axis=0)
    d_rows = [jnp.broadcast_to(T_long[:, s][None, :], (f, M)) for s in range(S)]
    d_rows += [jnp.broadcast_to(T_res[:, p][None, :] / float(P), (out_c, M))
               for p in range(P)]
    D_expT = jnp.concatenate(d_rows, axis=0)                  # [Ftot, M]
    bias_col = bias.reshape(out_c, 1)

    kernel = _make_layer_kernel(Kp1, in_c, f, S, P, out_c, N, M)
    in_specs = [_resident(X_t.shape), _resident(Lt_pack.shape), _resident(W_lin.shape),
                _resident(Qpack.shape), _resident(W_brT.shape), _resident(D_expT.shape),
                _resident(QTpack.shape), _resident(bias_col.shape)]

    # NOTE: at realistic N the [K+1, N, 2N] L stream would be row-tiled with a
    # leading "parallel" grid axis (tile sized so double-buffered blocks fit the
    # per-chip VMEM budget — half the tile on v7x — optionally pl.Buffered(3));
    # at N=16 the full stack is resident, so a single grid step is optimal.
    return pl.pallas_call(
        kernel,
        grid=(1,),
        in_specs=in_specs,
        out_specs=_resident((2 * out_c, N)),
        out_shape=jax.ShapeDtypeStruct((2 * out_c, N), F32),
        compiler_params=pltpu.CompilerParams(
            dimension_semantics=("arbitrary",),
            vmem_limit_bytes=_vmem_limit_bytes()),
    )(X_t, Lt_pack, W_lin, Qpack, W_brT, D_expT, QTpack, bias_col)


# ----------------------------- head kernel (1x1 conv + softmax) -----------------------------

def _head_kernel(x_ref, w_ref, b_ref, o_ref):
    # Input is already [2F, N] (channels on sublanes) -> no transpose needed.
    logits = _mm(w_ref[...], x_ref[...]) + b_ref[...]         # [label_dim, N]
    m = jnp.max(logits, axis=0, keepdims=True)
    e = jnp.exp(logits - m)
    denom = jnp.sum(e, axis=0, keepdims=True)
    o_ref[...] = e * pl.reciprocal(denom, approx=False)       # exact softmax


def pallas_head(X_t, w2d, b2d):
    N = X_t.shape[-1]
    L = w2d.shape[0]
    return pl.pallas_call(
        _head_kernel,
        grid=(1,),
        in_specs=[_resident(X_t.shape), _resident(w2d.shape), _resident(b2d.shape)],
        out_specs=_resident((L, N)),
        out_shape=jax.ShapeDtypeStruct((L, N), F32),
        compiler_params=pltpu.CompilerParams(
            dimension_semantics=("arbitrary",),
            vmem_limit_bytes=_vmem_limit_bytes()),
    )(X_t, w2d, b2d)


# ----------------------------- model (glue in plain JAX) -----------------------------

def init_cagn_conv_params(key, in_c, out_c, K, num_scale_long, short_long):
    out_c_cheb = out_c // (num_scale_long + 1)
    k1, k2, k3 = jax.random.split(key, 3)
    stdv = 1.0 / math.sqrt(out_c_cheb)
    weight = jax.random.uniform(k1, (K + 1, in_c, out_c_cheb), F32, -stdv, stdv)
    bnd_long = math.sqrt(6.0 / (in_c + out_c_cheb))      # xavier_uniform bound
    weight_long = jax.random.uniform(k2, (num_scale_long, in_c, out_c_cheb), F32,
                                     -bnd_long, bnd_long)
    bnd_res = math.sqrt(6.0 / (in_c + out_c))
    weight_res = jax.random.uniform(k3, (short_long, in_c, out_c), F32, -bnd_res, bnd_res)
    bias = jnp.zeros((1, out_c), F32)
    return dict(weight=weight, weight_long=weight_long, weight_res=weight_res, bias=bias)


def cagn_lanczos_forward(params, Xr, Xi, multihopCov, multihopRes):
    Qr = params["Qreal"]
    Qi = params["Qimag"]
    R = params["R"]
    # Layer-invariant spectral data, hoisted out of the layer loop.
    Qpack = jnp.concatenate([Qr, Qi], axis=-1)                          # [N, 2M]
    QTpack = jnp.concatenate([Qr.T, Qi.T, Qi.T, -Qr.T], axis=0)         # [4M, N]
    T_long = jnp.stack([R ** p for p in multihopCov], axis=-1).astype(F32)   # [M, S]
    T_res = jnp.stack([R ** p for p in multihopRes], axis=-1).astype(F32)    # [M, P]
    Lt_pack = jnp.stack(
        [jnp.concatenate([lr.T, li.T], axis=-1)
         for lr, li in zip(params["L_real"], params["L_imag"])],
        axis=0).astype(L_DTYPE)                                         # [K+1, N, 2N]

    # Packed [2*C, N] activation slab: real rows then imag rows, nodes on lanes.
    X_t = jnp.concatenate([Xr.T, Xi.T], axis=0).astype(F32)
    for lp in params["chebs"]:
        X_t = pallas_cagn_conv_layer(Lt_pack, lp, X_t, Qpack, QTpack, T_long, T_res)
        # complex ReLU is fused into the layer kernel's epilogue.

    # TODO(synk): F.dropout(p=self.dropout) is only active in training mode; inference identity here.
    w2d = params["conv_w"][:, :, 0]              # [label_dim, 2F]
    b2d = params["conv_b"].reshape(-1, 1)        # [label_dim, 1]
    probs_t = pallas_head(X_t, w2d, b2d)         # [label_dim, N]
    return probs_t[None, :, :]                   # [1, label_dim, N] (torch NCL)


# ----------------------------- pure-JAX reference -----------------------------

def ref_forward(params, Xr, Xi, multihopCov, multihopRes):
    def proc(lr, li, w, xr, xi):
        xr_w = xr @ w
        xi_w = xi @ w
        return jnp.stack([lr @ xr_w - li @ xi_w, li @ xr_w + lr @ xi_w])

    def conv_fwd(lp, xr, xi):
        W, W_long, W_res, b = lp["weight"], lp["weight_long"], lp["weight_res"], lp["bias"]
        S, P = len(multihopCov), len(multihopRes)
        R, Qr, Qi = params["R"], params["Qreal"], params["Qimag"]
        filt = []
        for p in list(multihopCov) + list(multihopRes):
            d = jnp.diag(R ** p)
            Qdr = Qr @ d
            Qdi = Qi @ d
            filt.append((Qdr @ Qr.T + Qdi @ Qi.T, Qdi @ Qr.T - Qdr @ Qi.T))
        res = sum(proc(params["L_real"][i], params["L_imag"][i], W[i], xr, xi)
                  for i in range(len(params["L_real"])))
        long_stack = jnp.stack([proc(filt[i][0], filt[i][1], W_long[i], xr, xi)
                                for i in range(S)]).reshape(2, xr.shape[0], -1)
        res_mean = jnp.mean(jnp.stack([proc(filt[S + i][0], filt[S + i][1], W_res[i], xr, xi)
                                       for i in range(P)]), axis=0)
        result = jnp.concatenate([res, long_stack], axis=-1)
        W01 = jnp.concatenate([W[0], W[1]], axis=-1)
        real = result[0] + xr @ W01 + res_mean[0] + b
        imag = result[1] + xi @ W01 + res_mean[1] + b
        return real, imag

    real, imag = Xr, Xi
    for lp in params["chebs"]:
        real, imag = conv_fwd(lp, real, imag)
        mask = (real >= 0).astype(F32)
        real, imag = mask * real, mask * imag
    x = jnp.concatenate([real, imag], axis=-1)
    logits = x @ params["conv_w"][:, :, 0].T + params["conv_b"].reshape(1, -1)
    probs = jax.nn.softmax(logits, axis=-1)
    return probs.T[None, :, :]


# ----------------------------- main -----------------------------

if __name__ == "__main__":
    # Small shapes consistent with the module's forward semantics.
    N, M = 16, 8                    # nodes, number of Ritz/eigen vectors
    in_c, num_filter, K, label_dim = 4, 4, 2, 2
    n_layers = 2
    multihopCov = [2]               # len must be 1 for the module's shapes to line up
    multihopRes = [1, 3]

    key = jax.random.PRNGKey(0)
    keys = jax.random.split(key, 16)

    L_real_list = [0.3 * jax.random.normal(keys[i], (N, N), F32) for i in range(K + 1)]
    L_imag_list = [0.3 * jax.random.normal(keys[3 + i], (N, N), F32) for i in range(K + 1)]
    Qreal = 0.3 * jax.random.normal(keys[6], (N, M), F32)
    Qimag = 0.3 * jax.random.normal(keys[7], (N, M), F32)
    R = jax.random.uniform(keys[8], (M,), F32, 0.2, 0.9)
    Xr = jax.random.normal(keys[9], (N, in_c), F32)
    Xi = jax.random.normal(keys[10], (N, in_c), F32)

    cheb_params = []
    layer_in = in_c
    for layer_idx in range(n_layers):
        cheb_params.append(init_cagn_conv_params(keys[11 + layer_idx], layer_in, num_filter,
                                                 K, len(multihopCov), len(multihopRes)))
        layer_in = num_filter

    twoF = 2 * num_filter
    bnd = 1.0 / math.sqrt(twoF)
    conv_w = jax.random.uniform(keys[13], (label_dim, twoF, 1), F32, -bnd, bnd)
    conv_b = jax.random.uniform(keys[14], (label_dim,), F32, -bnd, bnd)

    params = dict(chebs=cheb_params, conv_w=conv_w, conv_b=conv_b,
                  L_real=L_real_list, L_imag=L_imag_list,
                  Qreal=Qreal, Qimag=Qimag, R=R)

    fwd = jax.jit(lambda p, xr, xi: cagn_lanczos_forward(p, xr, xi, multihopCov, multihopRes))
    out = jax.block_until_ready(fwd(params, Xr, Xi))

    ref = jax.block_until_ready(ref_forward(params, Xr, Xi, multihopCov, multihopRes))
    assert out.shape == (1, label_dim, N), out.shape
    if not np.allclose(np.asarray(out), np.asarray(ref), rtol=2e-2, atol=2e-2):
        raise AssertionError("Pallas output does not match pure-JAX reference")

    print("KERNEL_OK")
</pallas_src>

<mosaic_0001>
module attributes {stable_mosaic.version = 11 : i64} {
  func.func @_head_kernel(%arg0: i32, %arg1: memref<8x16xf32, #tpu.memory_space<vmem>>, %arg2: memref<2x8xf32, #tpu.memory_space<vmem>>, %arg3: memref<2x1xf32, #tpu.memory_space<vmem>>, %arg4: memref<2x16xf32, #tpu.memory_space<vmem>>) attributes {dimension_semantics = [#tpu.dimension_semantics<arbitrary>], iteration_bounds = array<i64: 1>, scalar_prefetch = 0 : i64, scratch_operands = 0 : i64, tpu.core_type = #tpu.core_type<tc>, window_params = [{pipeline_mode = #tpu.pipeline_mode<synchronous>, transform_indices = @transform_0, window_bounds = array<i64: 8, 16>}, {pipeline_mode = #tpu.pipeline_mode<synchronous>, transform_indices = @transform_1, window_bounds = array<i64: 2, 8>}, {pipeline_mode = #tpu.pipeline_mode<synchronous>, transform_indices = @transform_2, window_bounds = array<i64: 2, 1>}, {pipeline_mode = #tpu.pipeline_mode<synchronous>, transform_indices = @transform_3, window_bounds = array<i64: 2, 16>}]} {
    %c0 = arith.constant 0 : index
    %c0_0 = arith.constant 0 : index
    %0 = vector.load %arg2[%c0, %c0_0] : memref<2x8xf32, #tpu.memory_space<vmem>>, vector<2x8xf32>
    %c0_1 = arith.constant 0 : index
    %c0_2 = arith.constant 0 : index
    %1 = vector.load %arg1[%c0_1, %c0_2] : memref<8x16xf32, #tpu.memory_space<vmem>>, vector<8x16xf32>
    %cst = arith.constant dense<0.000000e+00> : vector<2x16xf32>
    %2 = tpu.matmul %0, %1, %cst {dimension_numbers = #tpu.dot_dimension_numbers<[1], [0], [0], [1], [0, 0, 1, 1], [], []>} : vector<2x8xf32>, vector<8x16xf32>, vector<2x16xf32> -> vector<2x16xf32>
    %c0_3 = arith.constant 0 : index
    %c0_4 = arith.constant 0 : index
    %3 = vector.load %arg3[%c0_3, %c0_4] : memref<2x1xf32, #tpu.memory_space<vmem>>, vector<2x1xf32>
    %4 = vector.broadcast %3 : vector<2x1xf32> to vector<2x16xf32>
    %5 = arith.addf %2, %4 : vector<2x16xf32>
    %cst_5 = arith.constant dense<0xFF800000> : vector<16xf32>
    %6 = vector.multi_reduction <maximumf>, %5, %cst_5 [0] : vector<2x16xf32> to vector<16xf32>
    %7 = vector.shape_cast %6 : vector<16xf32> to vector<1x16xf32>
    %8 = vector.broadcast %7 : vector<1x16xf32> to vector<2x16xf32>
    %9 = arith.subf %5, %8 : vector<2x16xf32>
    %10 = math.exp %9 : vector<2x16xf32>
    %cst_6 = arith.constant dense<0.000000e+00> : vector<16xf32>
    %11 = vector.multi_reduction <add>, %10, %cst_6 [0] : vector<2x16xf32> to vector<16xf32>
    %12 = vector.shape_cast %11 : vector<16xf32> to vector<1x16xf32>
    %13 = tpu.reciprocal %12 : vector<1x16xf32> -> vector<1x16xf32>
    %14 = vector.broadcast %13 : vector<1x16xf32> to vector<2x16xf32>
    %15 = arith.mulf %10, %14 : vector<2x16xf32>
    %c0_7 = arith.constant 0 : index
    %c0_8 = arith.constant 0 : index
    %16 = vector.load %arg4[%c0_7, %c0_8] : memref<2x16xf32, #tpu.memory_space<vmem>>, vector<2x16xf32>
    tpu.vector_store %arg4[%c0_7, %c0_8], %15 {strides = array<i32>} : memref<2x16xf32, #tpu.memory_space<vmem>>, vector<2x16xf32>,
    return
  }
  func.func @transform_0(%arg0: i32) -> (i32, i32) {
    %c0_i32 = arith.constant 0 : i32
    %c0_i32_0 = arith.constant 0 : i32
    %c0_i32_1 = arith.constant 0 : i32
    return %c0_i32, %c0_i32_0 : i32, i32
  }
  func.func @transform_1(%arg0: i32) -> (i32, i32) {
    %c0_i32 = arith.constant 0 : i32
    %c0_i32_0 = arith.constant 0 : i32
    %c0_i32_1 = arith.constant 0 : i32
    return %c0_i32, %c0_i32_0 : i32, i32
  }
  func.func @transform_2(%arg0: i32) -> (i32, i32) {
    %c0_i32 = arith.constant 0 : i32
    %c0_i32_0 = arith.constant 0 : i32
    %c0_i32_1 = arith.constant 0 : i32
    return %c0_i32, %c0_i32_0 : i32, i32
  }
  func.func @transform_3(%arg0: i32) -> (i32, i32) {
    %c0_i32 = arith.constant 0 : i32
    %c0_i32_0 = arith.constant 0 : i32
    %c0_i32_1 = arith.constant 0 : i32
    return %c0_i32, %c0_i32_0 : i32, i32
  }
}

module attributes {stable_mosaic.version = 11 : i64} {
  func.func @kernel(%arg0: i32, %arg1: memref<8x16xf32, #tpu.memory_space<vmem>>, %arg2: memref<3x16x32xf32, #tpu.memory_space<vmem>>, %arg3: memref<20x8xf32, #tpu.memory_space<vmem>>, %arg4: memref<16x16xf32, #tpu.memory_space<vmem>>, %arg5: memref<10x4xf32, #tpu.memory_space<vmem>>, %arg6: memref<10x8xf32, #tpu.memory_space<vmem>>, %arg7: memref<32x16xf32, #tpu.memory_space<vmem>>, %arg8: memref<4x1xf32, #tpu.memory_space<vmem>>, %arg9: memref<8x16xf32, #tpu.memory_space<vmem>>) attributes {dimension_semantics = [#tpu.dimension_semantics<arbitrary>], iteration_bounds = array<i64: 1>, scalar_prefetch = 0 : i64, scratch_operands = 0 : i64, tpu.core_type = #tpu.core_type<tc>, window_params = [{pipeline_mode = #tpu.pipeline_mode<synchronous>, transform_indices = @transform_0, window_bounds = array<i64: 8, 16>}, {pipeline_mode = #tpu.pipeline_mode<synchronous>, transform_indices = @transform_1, window_bounds = array<i64: 3, 16, 32>}, {pipeline_mode = #tpu.pipeline_mode<synchronous>, transform_indices = @transform_2, window_bounds = array<i64: 20, 8>}, {pipeline_mode = #tpu.pipeline_mode<synchronous>, transform_indices = @transform_3, window_bounds = array<i64: 16, 16>}, {pipeline_mode = #tpu.pipeline_mode<synchronous>, transform_indices = @transform_4, window_bounds = array<i64: 10, 4>}, {pipeline_mode = #tpu.pipeline_mode<synchronous>, transform_indices = @transform_5, window_bounds = array<i64: 10, 8>}, {pipeline_mode = #tpu.pipeline_mode<synchronous>, transform_indices = @transform_6, window_bounds = array<i64: 32, 16>}, {pipeline_mode = #tpu.pipeline_mode<synchronous>, transform_indices = @transform_7, window_bounds = array<i64: 4, 1>}, {pipeline_mode = #tpu.pipeline_mode<synchronous>, transform_indices = @transform_8, window_bounds = array<i64: 8, 16>}]} {
    %c0 = arith.constant 0 : index
    %c0_0 = arith.constant 0 : index
    %0 = vector.load %arg1[%c0, %c0_0] : memref<8x16xf32, #tpu.memory_space<vmem>>, vector<8x16xf32>
    %c0_1 = arith.constant 0 : index
    %c0_2 = arith.constant 0 : index
    %1 = vector.load %arg3[%c0_1, %c0_2] : memref<20x8xf32, #tpu.memory_space<vmem>>, vector<20x8xf32>
    %cst = arith.constant dense<0.000000e+00> : vector<20x16xf32>
    %2 = tpu.matmul %1, %0, %cst {dimension_numbers = #tpu.dot_dimension_numbers<[1], [0], [0], [1], [0, 0, 1, 1], [], []>} : vector<20x8xf32>, vector<8x16xf32>, vector<20x16xf32> -> vector<20x16xf32>
    %3 = vector.extract_strided_slice %2 {offsets = [0, 0], sizes = [4, 16], strides = [1, 1]} : vector<20x16xf32> to vector<4x16xf32>
    %c0_3 = arith.constant 0 : index
    %c0_4 = arith.constant 0 : index
    %c0_5 = arith.constant 0 : index
    %4 = vector.load %arg2[%c0_3, %c0_4, %c0_5] : memref<3x16x32xf32, #tpu.memory_space<vmem>>, vector<1x16x32xf32>
    %5 = vector.shape_cast %4 : vector<1x16x32xf32> to vector<16x32xf32>
    %cst_6 = arith.constant dense<0.000000e+00> : vector<4x32xf32>
    %6 = tpu.matmul %3, %5, %cst_6 {dimension_numbers = #tpu.dot_dimension_numbers<[1], [0], [0], [1], [0, 0, 1, 1], [], []>} : vector<4x16xf32>, vector<16x32xf32>, vector<4x32xf32> -> vector<4x32xf32>
    %7 = vector.extract_strided_slice %6 {offsets = [0, 0], sizes = [4, 16], strides = [1, 1]} : vector<4x32xf32> to vector<4x16xf32>
    %8 = vector.extract_strided_slice %6 {offsets = [0, 16], sizes = [4, 16], strides = [1, 1]} : vector<4x32xf32> to vector<4x16xf32>
    %9 = vector.extract_strided_slice %7 {offsets = [0, 0], sizes = [2, 16], strides = [1, 1]} : vector<4x16xf32> to vector<2x16xf32>
    %10 = vector.extract_strided_slice %8 {offsets = [2, 0], sizes = [2, 16], strides = [1, 1]} : vector<4x16xf32> to vector<2x16xf32>
    %11 = arith.subf %9, %10 : vector<2x16xf32>
    %12 = vector.extract_strided_slice %8 {offsets = [0, 0], sizes = [2, 16], strides = [1, 1]} : vector<4x16xf32> to vector<2x16xf32>
    %13 = vector.extract_strided_slice %7 {offsets = [2, 0], sizes = [2, 16], strides = [1, 1]} : vector<4x16xf32> to vector<2x16xf32>
    %14 = arith.addf %12, %13 : vector<2x16xf32>
    %15 = vector.extract_strided_slice %2 {offsets = [4, 0], sizes = [4, 16], strides = [1, 1]} : vector<20x16xf32> to vector<4x16xf32>
    %c1 = arith.constant 1 : index
    %c0_7 = arith.constant 0 : index
    %c0_8 = arith.constant 0 : index
    %16 = vector.load %arg2[%c1, %c0_7, %c0_8] : memref<3x16x32xf32, #tpu.memory_space<vmem>>, vector<1x16x32xf32>
    %17 = vector.shape_cast %16 : vector<1x16x32xf32> to vector<16x32xf32>
    %cst_9 = arith.constant dense<0.000000e+00> : vector<4x32xf32>
    %18 = tpu.matmul %15, %17, %cst_9 {dimension_numbers = #tpu.dot_dimension_numbers<[1], [0], [0], [1], [0, 0, 1, 1], [], []>} : vector<4x16xf32>, vector<16x32xf32>, vector<4x32xf32> -> vector<4x32xf32>
    %19 = vector.extract_strided_slice %18 {offsets = [0, 0], sizes = [4, 16], strides = [1, 1]} : vector<4x32xf32> to vector<4x16xf32>
    %20 = vector.extract_strided_slice %18 {offsets = [0, 16], sizes = [4, 16], strides = [1, 1]} : vector<4x32xf32> to vector<4x16xf32>
    %21 = vector.extract_strided_slice %19 {offsets = [0, 0], sizes = [2, 16], strides = [1, 1]} : vector<4x16xf32> to vector<2x16xf32>
    %22 = vector.extract_strided_slice %20 {offsets = [2, 0], sizes = [2, 16], strides = [1, 1]} : vector<4x16xf32> to vector<2x16xf32>
    %23 = arith.subf %21, %22 : vector<2x16xf32>
    %24 = vector.extract_strided_slice %20 {offsets = [0, 0], sizes = [2, 16], strides = [1, 1]} : vector<4x16xf32> to vector<2x16xf32>
    %25 = vector.extract_strided_slice %19 {offsets = [2, 0], sizes = [2, 16], strides = [1, 1]} : vector<4x16xf32> to vector<2x16xf32>
    %26 = arith.addf %24, %25 : vector<2x16xf32>
    %27 = arith.addf %11, %23 : vector<2x16xf32>
    %28 = arith.addf %14, %26 : vector<2x16xf32>
    %29 = vector.extract_strided_slice %2 {offsets = [8, 0], sizes = [4, 16], strides = [1, 1]} : vector<20x16xf32> to vector<4x16xf32>
    %c2 = arith.constant 2 : index
    %c0_10 = arith.constant 0 : index
    %c0_11 = arith.constant 0 : index
    %30 = vector.load %arg2[%c2, %c0_10, %c0_11] : memref<3x16x32xf32, #tpu.memory_space<vmem>>, vector<1x16x32xf32>
    %31 = vector.shape_cast %30 : vector<1x16x32xf32> to vector<16x32xf32>
    %cst_12 = arith.constant dense<0.000000e+00> : vector<4x32xf32>
    %32 = tpu.matmul %29, %31, %cst_12 {dimension_numbers = #tpu.dot_dimension_numbers<[1], [0], [0], [1], [0, 0, 1, 1], [], []>} : vector<4x16xf32>, vector<16x32xf32>, vector<4x32xf32> -> vector<4x32xf32>
    %33 = vector.extract_strided_slice %32 {offsets = [0, 0], sizes = [4, 16], strides = [1, 1]} : vector<4x32xf32> to vector<4x16xf32>
    %34 = vector.extract_strided_slice %32 {offsets = [0, 16], sizes = [4, 16], strides = [1, 1]} : vector<4x32xf32> to vector<4x16xf32>
    %35 = vector.extract_strided_slice %33 {offsets = [0, 0], sizes = [2, 16], strides = [1, 1]} : vector<4x16xf32> to vector<2x16xf32>
    %36 = vector.extract_strided_slice %34 {offsets = [2, 0], sizes = [2, 16], strides = [1, 1]} : vector<4x16xf32> to vector<2x16xf32>
    %37 = arith.subf %35, %36 : vector<2x16xf32>
    %38 = vector.extract_strided_slice %34 {offsets = [0, 0], sizes = [2, 16], strides = [1, 1]} : vector<4x16xf32> to vector<2x16xf32>
    %39 = vector.extract_strided_slice %33 {offsets = [2, 0], sizes = [2, 16], strides = [1, 1]} : vector<4x16xf32> to vector<2x16xf32>
    %40 = arith.addf %38, %39 : vector<2x16xf32>
    %41 = arith.addf %27, %37 : vector<2x16xf32>
    %42 = arith.addf %28, %40 : vector<2x16xf32>
    %c0_13 = arith.constant 0 : index
    %c0_14 = arith.constant 0 : index
    %43 = vector.load %arg4[%c0_13, %c0_14] : memref<16x16xf32, #tpu.memory_space<vmem>>, vector<16x16xf32>
    %cst_15 = arith.constant dense<0.000000e+00> : vector<8x16xf32>
    %44 = tpu.matmul %0, %43, %cst_15 {dimension_numbers = #tpu.dot_dimension_numbers<[1], [0], [0], [1], [0, 0, 1, 1], [], []>} : vector<8x16xf32>, vector<16x16xf32>, vector<8x16xf32> -> vector<8x16xf32>
    %45 = vector.extract_strided_slice %44 {offsets = [0, 0], sizes = [4, 8], strides = [1, 1]} : vector<8x16xf32> to vector<4x8xf32>
    %46 = vector.extract_strided_slice %44 {offsets = [4, 8], sizes = [4, 8], strides = [1, 1]} : vector<8x16xf32> to vector<4x8xf32>
    %47 = arith.addf %45, %46 : vector<4x8xf32>
    %48 = vector.extract_strided_slice %44 {offsets = [0, 8], sizes = [4, 8], strides = [1, 1]} : vector<8x16xf32> to vector<4x8xf32>
    %49 = vector.extract_strided_slice %44 {offsets = [4, 0], sizes = [4, 8], strides = [1, 1]} : vector<8x16xf32> to vector<4x8xf32>
    %50 = arith.subf %48, %49 : vector<4x8xf32>
    %c0_16 = arith.constant 0 : index
    %c0_17 = arith.constant 0 : index
    %51 = vector.load %arg5[%c0_16, %c0_17] : memref<10x4xf32, #tpu.memory_space<vmem>>, vector<10x4xf32>
    %c0_18 = arith.constant 0 : index
    %c0_19 = arith.constant 0 : index
    %52 = vector.load %arg6[%c0_18, %c0_19] : memref<10x8xf32, #tpu.memory_space<vmem>>, vector<10x8xf32>
    %cst_20 = arith.constant dense<0.000000e+00> : vector<10x8xf32>
    %53 = tpu.matmul %51, %47, %cst_20 {dimension_numbers = #tpu.dot_dimension_numbers<[1], [0], [0], [1], [0, 0, 1, 1], [], []>} : vector<10x4xf32>, vector<4x8xf32>, vector<10x8xf32> -> vector<10x8xf32>
    %54 = arith.mulf %52, %53 : vector<10x8xf32>
    %cst_21 = arith.constant dense<0.000000e+00> : vector<10x8xf32>
    %55 = tpu.matmul %51, %50, %cst_21 {dimension_numbers = #tpu.dot_dimension_numbers<[1], [0], [0], [1], [0, 0, 1, 1], [], []>} : vector<10x4xf32>, vector<4x8xf32>, vector<10x8xf32> -> vector<10x8xf32>
    %56 = arith.mulf %52, %55 : vector<10x8xf32>
    %57 = vector.extract_strided_slice %54 {offsets = [2, 0], sizes = [4, 8], strides = [1, 1]} : vector<10x8xf32> to vector<4x8xf32>
    %58 = vector.extract_strided_slice %56 {offsets = [2, 0], sizes = [4, 8], strides = [1, 1]} : vector<10x8xf32> to vector<4x8xf32>
    %59 = vector.extract_strided_slice %54 {offsets = [6, 0], sizes = [4, 8], strides = [1, 1]} : vector<10x8xf32> to vector<4x8xf32>
    %60 = arith.addf %57, %59 : vector<4x8xf32>
    %61 = vector.extract_strided_slice %56 {offsets = [6, 0], sizes = [4, 8], strides = [1, 1]} : vector<10x8xf32> to vector<4x8xf32>
    %62 = arith.addf %58, %61 : vector<4x8xf32>
    %63 = vector.extract_strided_slice %54 {offsets = [0, 0], sizes = [2, 8], strides = [1, 1]} : vector<10x8xf32> to vector<2x8xf32>
    %64 = tpu.concatenate %63, %60 in 0 : vector<2x8xf32>, vector<4x8xf32> -> vector<6x8xf32>
    %65 = vector.extract_strided_slice %56 {offsets = [0, 0], sizes = [2, 8], strides = [1, 1]} : vector<10x8xf32> to vector<2x8xf32>
    %66 = tpu.concatenate %65, %62 in 0 : vector<2x8xf32>, vector<4x8xf32> -> vector<6x8xf32>
    %67 = tpu.concatenate %64, %66 in 1 : vector<6x8xf32>, vector<6x8xf32> -> vector<6x16xf32>
    %c0_22 = arith.constant 0 : index
    %c0_23 = arith.constant 0 : index
    %68 = vector.load %arg7[%c0_22, %c0_23] : memref<32x16xf32, #tpu.memory_space<vmem>>, vector<32x16xf32>
    %69 = vector.extract_strided_slice %68 {offsets = [0, 0], sizes = [16, 16], strides = [1, 1]} : vector<32x16xf32> to vector<16x16xf32>
    %cst_24 = arith.constant dense<0.000000e+00> : vector<6x16xf32>
    %70 = tpu.matmul %67, %69, %cst_24 {dimension_numbers = #tpu.dot_dimension_numbers<[1], [0], [0], [1], [0, 0, 1, 1], [], []>} : vector<6x16xf32>, vector<16x16xf32>, vector<6x16xf32> -> vector<6x16xf32>
    %71 = vector.extract_strided_slice %68 {offsets = [16, 0], sizes = [16, 16], strides = [1, 1]} : vector<32x16xf32> to vector<16x16xf32>
    %cst_25 = arith.constant dense<0.000000e+00> : vector<6x16xf32>
    %72 = tpu.matmul %67, %71, %cst_25 {dimension_numbers = #tpu.dot_dimension_numbers<[1], [0], [0], [1], [0, 0, 1, 1], [], []>} : vector<6x16xf32>, vector<16x16xf32>, vector<6x16xf32> -> vector<6x16xf32>
    %c0_26 = arith.constant 0 : index
    %c0_27 = arith.constant 0 : index
    %73 = vector.load %arg8[%c0_26, %c0_27] : memref<4x1xf32, #tpu.memory_space<vmem>>, vector<4x1xf32>
    %74 = vector.extract_strided_slice %70 {offsets = [0, 0], sizes = [2, 16], strides = [1, 1]} : vector<6x16xf32> to vector<2x16xf32>
    %75 = tpu.concatenate %41, %74 in 0 : vector<2x16xf32>, vector<2x16xf32> -> vector<4x16xf32>
    %76 = vector.extract_strided_slice %2 {offsets = [12, 0], sizes = [4, 16], strides = [1, 1]} : vector<20x16xf32> to vector<4x16xf32>
    %77 = arith.addf %75, %76 : vector<4x16xf32>
    %78 = vector.extract_strided_slice %70 {offsets = [2, 0], sizes = [4, 16], strides = [1, 1]} : vector<6x16xf32> to vector<4x16xf32>
    %79 = arith.addf %77, %78 : vector<4x16xf32>
    %80 = vector.broadcast %73 : vector<4x1xf32> to vector<4x16xf32>
    %81 = arith.addf %79, %80 : vector<4x16xf32>
    %82 = vector.extract_strided_slice %72 {offsets = [0, 0], sizes = [2, 16], strides = [1, 1]} : vector<6x16xf32> to vector<2x16xf32>
    %83 = tpu.concatenate %42, %82 in 0 : vector<2x16xf32>, vector<2x16xf32> -> vector<4x16xf32>
    %84 = vector.extract_strided_slice %2 {offsets = [16, 0], sizes = [4, 16], strides = [1, 1]} : vector<20x16xf32> to vector<4x16xf32>
    %85 = arith.addf %83, %84 : vector<4x16xf32>
    %86 = vector.extract_strided_slice %72 {offsets = [2, 0], sizes = [4, 16], strides = [1, 1]} : vector<6x16xf32> to vector<4x16xf32>
    %87 = arith.addf %85, %86 : vector<4x16xf32>
    %88 = vector.broadcast %73 : vector<4x1xf32> to vector<4x16xf32>
    %89 = arith.addf %87, %88 : vector<4x16xf32>
    %cst_28 = arith.constant 0.000000e+00 : f32
    %90 = vector.broadcast %cst_28 : f32 to vector<4x16xf32>
    %91 = arith.cmpf oge, %81, %90 : vector<4x16xf32>
    %92 = arith.extui %91 : vector<4x16xi1> to vector<4x16xi32>
    %93 = arith.sitofp %92 : vector<4x16xi32> to vector<4x16xf32>
    %94 = arith.mulf %93, %81 : vector<4x16xf32>
    %95 = arith.mulf %93, %89 : vector<4x16xf32>
    %96 = tpu.concatenate %94, %95 in 0 : vector<4x16xf32>, vector<4x16xf32> -> vector<8x16xf32>
    %c0_29 = arith.constant 0 : index
    %c0_30 = arith.constant 0 : index
    %97 = vector.load %arg9[%c0_29, %c0_30] : memref<8x16xf32, #tpu.memory_space<vmem>>, vector<8x16xf32>
    tpu.vector_store %arg9[%c0_29, %c0_30], %96 {strides = array<i32>} : memref<8x16xf32, #tpu.memory_space<vmem>>, vector<8x16xf32>,
    return
  }
  func.func @transform_0(%arg0: i32) -> (i32, i32) {
    %c0_i32 = arith.constant 0 : i32
    %c0_i32_0 = arith.constant 0 : i32
    %c0_i32_1 = arith.constant 0 : i32
    return %c0_i32, %c0_i32_0 : i32, i32
  }
  func.func @transform_1(%arg0: i32) -> (i32, i32, i32) {
    %c0_i32 = arith.constant 0 : i32
    %c0_i32_0 = arith.constant 0 : i32
    %c0_i32_1 = arith.constant 0 : i32
    %c0_i32_2 = arith.constant 0 : i32
    return %c0_i32, %c0_i32_0, %c0_i32_1 : i32, i32, i32
  }
  func.func @transform_2(%arg0: i32) -> (i32, i32) {
    %c0_i32 = arith.constant 0 : i32
    %c0_i32_0 = arith.constant 0 : i32
    %c0_i32_1 = arith.constant 0 : i32
    return %c0_i32, %c0_i32_0 : i32, i32
  }
  func.func @transform_3(%arg0: i32) -> (i32, i32) {
    %c0_i32 = arith.constant 0 : i32
    %c0_i32_0 = arith.constant 0 : i32
    %c0_i32_1 = arith.constant 0 : i32
    return %c0_i32, %c0_i32_0 : i32, i32
  }
  func.func @transform_4(%arg0: i32) -> (i32, i32) {
    %c0_i32 = arith.constant 0 : i32
    %c0_i32_0 = arith.constant 0 : i32
    %c0_i32_1 = arith.constant 0 : i32
    return %c0_i32, %c0_i32_0 : i32, i32
  }
  func.func @transform_5(%arg0: i32) -> (i32, i32) {
    %c0_i32 = arith.constant 0 : i32
    %c0_i32_0 = arith.constant 0 : i32
    %c0_i32_1 = arith.constant 0 : i32
    return %c0_i32, %c0_i32_0 : i32, i32
  }
  func.func @transform_6(%arg0: i32) -> (i32, i32) {
    %c0_i32 = arith.constant 0 : i32
    %c0_i32_0 = arith.constant 0 : i32
    %c0_i32_1 = arith.constant 0 : i32
    return %c0_i32, %c0_i32_0 : i32, i32
  }
  func.func @transform_7(%arg0: i32) -> (i32, i32) {
    %c0_i32 = arith.constant 0 : i32
    %c0_i32_0 = arith.constant 0 : i32
    %c0_i32_1 = arith.constant 0 : i32
    return %c0_i32, %c0_i32_0 : i32, i32
  }
  func.func @transform_8(%arg0: i32) -> (i32, i32) {
    %c0_i32 = arith.constant 0 : i32
    %c0_i32_0 = arith.constant 0 : i32
    %c0_i32_1 = arith.constant 0 : i32
    return %c0_i32, %c0_i32_0 : i32, i32
  }
}

</mosaic_0001>

<bundles_post_ra>
// kernel: _lambda_.5
= control target key start
LH: loop header
LB: loop body
LE: loop exit
PB: predicated region body
PF: predicated region fallthrough
CT: control target
= control target key end

     0   :  { %vm23_vm0 = vcmask 64512   ;;  %v171_v2 = vmov 0.0   ;;  %vm172_vm1 = vmmov 0   ;;  %s210_s0 = inlined_call_operand.vmem [shape: f32[8,16], index: 0, kind: input, shape index: {}]   ;;  %s211_s1 = inlined_call_operand.vmem [shape: f32[2,8], index: 1, kind: input, shape index: {}]   ;;  %s212_s2 = inlined_call_operand.vmem [shape: f32[2,1], index: 2, kind: input, shape index: {}]   ;;  %s213_s3 = inlined_call_operand.hbm [shape: f32[2,16], index: 3, kind: output, shape index: {}]  }
   0x1   :  { %v16_v0 = vld [vmem:[%s210_s0] sm:$0xff]  ;;  %135 = vmatprep.subr.mxu0 %v171_v2  ;;  %137 = vmatprep.mubr.msk.f32.mxu0 %vm172_vm1, %v171_v2 }
   0x2   :  { %v15_v1 = vld [vmem:[%s211_s1] sm:$0x3] }
   0x3   :  { %v17_v3 = vld [vmem:[%s212_s2] sm:$0x3] }
   0x4   :  { %8 = vsyncpa [#allocation3], 0  ;;  %136 = vmatpush3.msra.mxu0 %v16_v0  ;;  %v173_v4 = vmov 0   ;;  %vm97_vm2 = vcmask 123904   ;;  %s174_s0 = smov [#allocation2]  }
   0x5   :  { %144 = vset.pattern.permute.xlu0 %v173_v4  ;;  %138 = vmatmul.mubr.msk.f32.vlgmr.msra.gmra.mxu0 %vm23_vm0, %v15_v1  ;;  %s124_s1 = sshll.u32 %s174_s0, 4  ;;  %s125_s1 = int_to_ptr.vmem [resolvable:$true] %s124_s1 }
   0x6   :  { %20 = vperm.xlu0 %144, %v17_v3   ;;  %s149_s2 = scalar_lea.vmem %s125_s1, 32  ;;  %p154_p1 = scmp.lt.s32.totalorder %s125_s1, %s125_s1 }
   0x7   :  { %p150_p0 = scmp.ne.s32.totalorder %s125_s1, %s149_s2  ;;  %p155_p2 = scmp.lt.s32.totalorder %s149_s2, %s149_s2 }
   0x9   :  { %p156_p3 = por %p155_p2, %p154_p1 }
   0xb   :  { %p157_p4 = pnand %p156_p3, %p150_p0 }
  0x81   :  { %v21_v5 = vpop.permute.xlu0 %20 }
  0xc5   :  { %v93_v6 = vpop.f32.mrf.mxu0 }
  0xc6   :  { %v94_v7 = vadd.f32 %v93_v6, %v21_v5 }
  0xc7   :  { %v139_v8 = vpop.f32.mrf.mxu0 }
  0xc8   :  { %v98_v9 = vsel %vm97_vm2, %v94_v7, -inf }
  0xc9   :  { %v99_v10 = vrot.slane %v98_v9, 4 }
  0xcb   :  { %v100_v11 = vmax.f32 %v98_v9, %v99_v10 }
  0xcd   :  { %v101_v12 = vrot.slane %v100_v11, 2 }
  0xcf   :  { %v102_v13 = vmax.f32 %v100_v11, %v101_v12 }
  0xd1   :  { %v103_v14 = vrot.slane %v102_v13, 1 }
  0xd3   :  { %v104_v15 = vmax.f32 %v102_v13, %v103_v14 }
  0xd5   :  { %v105_v16 = vsub.f32 %v94_v7, %v104_v15 }
  0xd7   :  { %v106_v17 = vmul.f32 1.442695, %v105_v16 }
  0xd9   :  { %145 = vpow2.f32 %v106_v17 }
  0xe6   :  { %v146_v18 = vpop.eup %145 }
  0xe7   :  { %v108_v19 = vsel %vm97_vm2, %v146_v18, 0.0 }
  0xe8   :  { %v109_v20 = vrot.slane %v108_v19, 4 }
  0xea   :  { %v110_v21 = vadd.f32 %v109_v20, %v108_v19 }
  0xec   :  { %v111_v22 = vrot.slane %v110_v21, 2 }
  0xee   :  { %v112_v23 = vadd.f32 %v111_v22, %v110_v21 }
  0xf0   :  { %v113_v24 = vrot.slane %v112_v23, 1 }
  0xf2   :  { %v114_v25 = vadd.f32 %v113_v24, %v112_v23 }
  0xf4   :  { %147 = vrcp.f32 %v114_v25 }
 0x101   :  { %v148_v26 = vpop.eup %147 }
 0x102   :  { %v116_v27 = vmul.f32 %v148_v26, %v146_v18 }
 0x104   :  { %117 = vst.msk [vmem:[#allocation2] sm:$0x3] %vm97_vm2, %v116_v27 }
 0x105   :  { %160 = shalt.err (!%p157_p4)
}
 0x106   :  { %127 = dma.vmem_to_hbm [thread:$0]  %s125_s1, 32, %s213_s3, [#allocation3]  }
 0x107   :  { %169 = dma.done.wait [#allocation3], 32  }
 0x108   :  { %170 = vsyncadd [#allocation3], 4294967264 }
 0x109   :  { %131 = vsyncpa [#allocation3], 1 }

// kernel: _lambda_.3
= control target key start
LH: loop header
LB: loop body
LE: loop exit
PB: predicated region body
PF: predicated region fallthrough
CT: control target
= control target key end

     0   :  { %vm33_vm0 = vcmask 64512   ;;  %v985_v0 = vmov 0.0   ;;  %vm986_vm1 = vmmov 0   ;;  %vm125_vm2 = vcmask 130048   ;;  %s987_s26 = smov 120   ;;  %s989_s9 = smov 16   ;;  %s1195_s0 = inlined_call_operand.vmem [shape: f32[8,16], index: 0, kind: input, shape index: {}]   ;;  %s1196_s2 = inlined_call_operand.vmem [shape: f32[20,8], index: 2, kind: input, shape index: {}]   ;;  %s1197_s3 = inlined_call_operand.vmem [shape: f32[16,16], index: 3, kind: input, shape index: {}]   ;;  %s1198_s1 = inlined_call_operand.vmem [shape: f32[3,16,32], index: 1, kind: input, shape index: {}]   ;;  %s1199_s4 = inlined_call_operand.vmem [shape: f32[10,4], index: 4, kind: input, shape index: {}]   ;;  %s1200_s6 = inlined_call_operand.vmem [shape: f32[32,16], index: 6, kind: input, shape index: {}]   ;;  %s1201_s5 = inlined_call_operand.vmem [shape: f32[10,8], index: 5, kind: input, shape index: {}]   ;;  %s1202_s7 = inlined_call_operand.vmem [shape: f32[4,1], index: 7, kind: input, shape index: {}]   ;;  %s1203_s8 = inlined_call_operand.vmem [shape: f32[8,16], index: 8, kind: output, shape index: {}]  }
   0x1   :  { %913 = vmatprep.subr.mxu0 %v985_v0  ;;  %v29_v1 = vld [vmem:[%s1195_s0] sm:$0xff]  ;;  %915 = vmatprep.mubr.msk.f32.mxu0 %vm986_vm1, %v985_v0  ;;  %v386_v3 = vld [vmem:[%s1197_s3 + $0x8] sm:$0xff]  ;;  %v32_v7 = vld [vmem:[%s1196_s2 + $0x10] sm:$0xf]  ;;  %vm474_vm3 = vcmask 31744   ;;  %vm481_vm4 = vcmask 1043456  }
   0x2   :  { %v30_v2 = vld [vmem:[%s1196_s2] sm:$0xff]  ;;  %914 = vmatpush3.msra.mxu0 %v29_v1  ;;  %924 = vmatprep.subr.mxu1 %v985_v0  ;;  %v124_v5 = vld [vmem:[%s1198_s1 + $0x8] sm:$0xff]  ;;  %v870_v9 = vld [vmem:[%s1198_s1 + $0x18] sm:$0xff]  ;;  %v990_v38 = vmov 0   ;;  %vm658_vm5 = vcmask 1041408  }
   0x3   :  { %916 = vmatmul.mubr.msk.f32.vlgmr.msra.gmra.mxu0 %vm33_vm0, %v30_v2  ;;  %945 = vmatprep.subr.mxu0 %v985_v0  ;;  %v385_v4 = vld [vmem:[%s1197_s3] sm:$0xff]  ;;  %v31_v6 = vld [vmem:[%s1196_s2 + $0x8] sm:$0xff]  ;;  %v869_v11 = vld [vmem:[%s1198_s1 + $0x10] sm:$0xff] }
   0x4   :  { %918 = vmatprep.mubr.msk.f32.mxu0 %vm986_vm1, %v985_v0  ;;  %946 = vmatpush3.msra.mxu0 %v386_v3  ;;  %v123_v8 = vld [vmem:[%s1198_s1] sm:$0xff]  ;;  %v873_v14 = vld [vmem:[%s1198_s1 + $0x28] sm:$0xff]  ;;  %v669_v40 = vld [vmem:[%s1200_s6 + $0x18] sm:$0xff] }
   0x5   :  { %947 = vmatprep.subr.mxu0 %v985_v0  ;;  %925 = vmatpush3.msra.mxu1 %v124_v5  ;;  %v872_v16 = vld [vmem:[%s1198_s1 + $0x20] sm:$0xff]  ;;  %s988_s1 = smov 8   ;;  %v471_v28 = vld [vmem:[%s1199_s4 + $0x8] sm:$0x3]  ;;  %v668_v42 = vld [vmem:[%s1200_s6 + $0x10] sm:$0xff] }
   0x6   :  { %948 = vmatpush3.msra.mxu0 %v385_v4  ;;  %926 = vmatprep.subr.mxu1 %v985_v0  ;;  %v470_v23 = vld [vmem:[%s1199_s4] sm:$0xff]  ;;  %v667_v39 = vld [vmem:[%s1200_s6 + $0x8] sm:$0xff] }
   0x7   :  { %919 = vmatmul.mubr.msk.f32.gmra.mxu0 %vm33_vm0, %v31_v6  ;;  %928 = vmatprep.mubr.msk.f32.mxu1 %vm986_vm1, %v985_v0  ;;  %v666_v41 = vld [vmem:[%s1200_s6] sm:$0xff]  ;;  %v473_v43 = vld [vmem:[%s1201_s5 + $0x8] sm:$0x3] }
   0x8   :  { %921 = vmatprep.mubr.msk.f32.mxu0 %vm986_vm1, %v985_v0  ;;  %927 = vmatpush3.msra.mxu1 %v123_v8  ;;  %v472_v45 = vld [vmem:[%s1201_s5] sm:$0xff]  ;;  %s991_s5 = smov 112  }
   0x9   :  { %931 = vmatprep.subr.mxu1 %v985_v0  ;;  %983 = vset.pattern.permute.xlu1 %v990_v38  ;;  %v813_v55 = vld [vmem:[%s1202_s7] sm:$0xf] }
   0xa   :  { %984 = vset.pattern.permute.xlu0 %v990_v38 }
   0xb   :  { %922 = vmatmul.mubr.msk.f32.gmra.mxu0 %vm33_vm0, %v32_v7 }
   0xc   :  { %949 = vmatprep.mubr.msk.f32.mxu0 %vm986_vm1, %v985_v0 }
   0xf   :  { %950 = vmatmul.mubr.msk.f32.vlgmr.msra.gmra.mxu0 %vm125_vm2, %v29_v1 }
  0x10   :  { %959 = vmatprep.mubr.msk.f32.mxu0 %vm474_vm3, %v470_v23 }
  0xc3   :  { %v109_v10 = vpop.f32.mrf.mxu0 }
  0xc4   :  { %929 = vmatmul.mubr.msk.f32.vlgmr.msra.gmra.mxu1 %vm125_vm2, %v109_v10  ;;  %v212_v13 = vrot.slane %v109_v10, 4 }
  0xc5   :  { %v917_v12 = vpop.f32.mrf.mxu0  ;;  %932 = vmatpush3.msra.mxu1 %v870_v9  ;;  %935 = vmatprep.mubr.msk.f32.mxu1 %vm986_vm1, %v985_v0 }
  0xc6   :  { %933 = vmatprep.subr.mxu1 %v985_v0 }
  0xc7   :  { %v1094_v15 = vpop.f32.mrf.mxu0  ;;  %934 = vmatpush3.msra.mxu1 %v869_v11 }
  0xc8   :  { %936 = vmatmul.mubr.msk.f32.vlgmr.msra.gmra.mxu1 %vm125_vm2, %v212_v13  ;;  %938 = vmatprep.subr.mxu1 %v985_v0 }
  0xc9   :  { %v920_v17 = vpop.f32.mrf.mxu0  ;;  %939 = vmatpush3.msra.mxu1 %v873_v14  ;;  %942 = vmatprep.mubr.msk.f32.mxu1 %vm986_vm1, %v985_v0 }
  0xca   :  { %940 = vmatprep.subr.mxu1 %v985_v0 }
  0xcb   :  { %v1104_v18 = vpop.f32.mrf.mxu0  ;;  %941 = vmatpush3.msra.mxu1 %v872_v16 }
  0xcc   :  { %943 = vmatmul.mubr.msk.f32.vlgmr.msra.gmra.mxu1 %vm125_vm2, %v1094_v15 }
  0xcd   :  { %v923_v19 = vpop.f32.mrf.mxu0  ;;  %954 = vmatprep.mubr.msk.f32.mxu1 %vm474_vm3, %v470_v23 }
  0xcf   :  { %v456_v20 = vpop.f32.mrf.mxu0 }
  0xd0   :  { %v461_v21 = vrot.slane %v456_v20, 4 }
  0xd1   :  { %v951_v22 = vpop.f32.mrf.mxu0 }
  0xd2   :  { %462 = vrot.lane.b32.xlu1 %v461_v21, %s987_s26  ;;  %466 = vrot.lane.b32.xlu0 %v461_v21, %s988_s1 }
 0x144   :  { %v463_v24 = vpop.permute.xlu1 %462  ;;  %v467_v25 = vpop.permute.xlu0 %466 }
 0x145   :  { %v465_v26 = vadd.f32 %v463_v24, %v456_v20  ;;  %v469_v27 = vsub.f32 %v456_v20, %v467_v25 }
 0x147   :  { %952 = vmatprep.subr.msk.mxu1 %vm481_vm4, %v465_v26  ;;  %563 = vrot.lane.b32.xlu0 %v469_v27, %s987_s26 }
 0x148   :  { %953 = vmatpush3.msk.msra.mxu1 %vm481_vm4, %v465_v26 }
 0x149   :  { %955 = vmatmul.mubr.msk.f32.vlgmr.msra.gmra.mxu1 %vm474_vm3, %v471_v28  ;;  %962 = vmatprep.subr.mxu1 %v985_v0 }
 0x14a   :  { %966 = vmatprep.mubr.msk.f32.mxu1 %vm986_vm1, %v985_v0  ;;  %963 = vmatpush3.msra.mxu1 %v667_v39  ;;  %v818_v39 = vrot.slane %v1094_v15, 4 }
 0x14b   :  { %964 = vmatprep.subr.mxu1 %v985_v0 }
 0x14c   :  { %965 = vmatpush3.msra.mxu1 %v666_v41 }
 0x184   :  { %v1123_v29 = vpop.f32.mrf.mxu1 }
 0x185   :  { %v200_v30 = vrot.slane %v1123_v29, 2 }
 0x186   :  { %v930_v31 = vpop.f32.mrf.mxu1 }
 0x187   :  { %205 = vrot.lane.b32.xlu0 %v200_v30, %s989_s9 }
 0x188   :  { %v1127_v32 = vpop.f32.mrf.mxu1 }
 0x189   :  { %v286_v54 = vrot.slane %v1127_v32, 2 }
 0x18a   :  { %v937_v33 = vpop.f32.mrf.mxu1 }
 0x18c   :  { %v1129_v34 = vpop.f32.mrf.mxu1 }
 0x18d   :  { %v374_v35 = vrot.slane %v1129_v34, 2 }
 0x18e   :  { %v944_v36 = vpop.f32.mrf.mxu1 }
 0x18f   :  { %379 = vrot.lane.b32.xlu0 %v374_v35, %s989_s9 }
 0x1b9   :  { %v564_v37 = vpop.permute.xlu0 %563 }
 0x1ba   :  { %957 = vmatprep.subr.msk.mxu0 %vm481_vm4, %v564_v37 }
 0x1bb   :  { %958 = vmatpush3.msk.msra.mxu0 %vm481_vm4, %v564_v37 }
 0x1bc   :  { %960 = vmatmul.mubr.msk.f32.vlgmr.msra.gmra.mxu0 %vm474_vm3, %v471_v28  ;;  %969 = vmatprep.subr.mxu0 %v985_v0 }
 0x1bd   :  { %973 = vmatprep.mubr.msk.f32.mxu0 %vm986_vm1, %v985_v0  ;;  %970 = vmatpush3.msra.mxu0 %v669_v40 }
 0x1be   :  { %971 = vmatprep.subr.mxu0 %v985_v0 }
 0x1bf   :  { %972 = vmatpush3.msra.mxu0 %v668_v42 }
 0x1f9   :  { %v206_v11 = vpop.permute.xlu0 %205 }
 0x1fa   :  { %v208_v14 = vadd.f32 %v206_v11, %v1123_v29 }
 0x201   :  { %v380_v16 = vpop.permute.xlu0 %379 }
 0x202   :  { %v382_v19 = vadd.f32 %v380_v16, %v1129_v34 }
 0x209   :  { %v956_v56 = vpop.f32.mrf.mxu1 }
 0x20a   :  { %v561_v58 = vmul.f32 %v956_v56, %v473_v43 }
 0x20b   :  { %v551_v57 = vpop.f32.mrf.mxu1 }
 0x20c   :  { %v560_v59 = vmul.f32 %v551_v57, %v472_v45  ;;  %v647_v60 = vrot.slane %v561_v58, 4 }
 0x20e   :  { %v646_v61 = vrot.slane %v560_v59, 4 }
 0x210   :  { %v648_v62 = vsel %vm481_vm4, %v646_v61, %v647_v60 }
 0x211   :  { %v650_v63 = vadd.f32 %v648_v62, %v560_v59 }
 0x213   :  { %v659_v1 = vsel %vm658_vm5, %v560_v59, %v650_v63 }
 0x27c   :  { %v961_v44 = vpop.f32.mrf.mxu0 }
 0x27d   :  { %v643_v46 = vmul.f32 %v961_v44, %v473_v43 }
 0x27e   :  { %v633_v47 = vpop.f32.mrf.mxu0 }
 0x27f   :  { %v642_v48 = vmul.f32 %v633_v47, %v472_v45  ;;  %v654_v49 = vrot.slane %v643_v46, 4 }
 0x281   :  { %v653_v50 = vrot.slane %v642_v48, 4 }
 0x283   :  { %v655_v51 = vsel %vm481_vm4, %v653_v50, %v654_v49 }
 0x284   :  { %v657_v52 = vadd.f32 %v655_v51, %v642_v48 }
 0x286   :  { %v660_v53 = vsel %vm658_vm5, %v642_v48, %v657_v52 }
 0x287   :  { %662 = vrot.lane.b32.xlu1 %v660_v53, %s988_s1 }
 0x28b   :  { %291 = vrot.lane.b32.xlu1 %v286_v54, %s989_s9 }
 0x28f   :  { %826 = vperm.xlu1 %983, %v813_v55  }
 0x293   :  { %837 = vrot.lane.b32.xlu1 %v1104_v18, %s989_s9 }
 0x297   :  { %201 = vrot.lane.b32.xlu1 %v200_v30, %s991_s5 }
 0x29b   :  { %375 = vrot.lane.b32.xlu1 %v374_v35, %s991_s5 }
 0x2f9   :  { %v663_v2 = vpop.permute.xlu1 %662 }
 0x2fa   :  { %v665_v3 = vsel %vm33_vm0, %v659_v1, %v663_v2 }
 0x2fb   :  { %967 = vmatmul.mubr.msk.f32.vlgmr.msra.gmra.mxu1 %vm125_vm2, %v665_v3  ;;  %974 = vmatmul.mubr.msk.f32.vlgmr.msra.gmra.mxu0 %vm125_vm2, %v665_v3 }
 0x2fd   :  { %v292_v10 = vpop.permute.xlu1 %291 }
 0x2fe   :  { %v294_v13 = vadd.f32 %v292_v10, %v1127_v32 }
 0x300   :  { %v296_v17 = vadd.f32 %v294_v13, %v208_v14 }
 0x302   :  { %v384_v20 = vadd.f32 %v382_v19, %v296_v17 }
 0x30a   :  { %v827_v12 = vpop.permute.xlu1 %826 }
 0x30e   :  { %v838_v18 = vpop.permute.xlu1 %837 }
 0x312   :  { %v202_v23 = vpop.permute.xlu1 %201 }
 0x313   :  { %v204_v31 = vsub.f32 %v1123_v29, %v202_v23 }
 0x316   :  { %v376_v28 = vpop.permute.xlu1 %375 }
 0x317   :  { %v378_v35 = vsub.f32 %v1129_v34, %v376_v28 }
 0x3bb   :  { %v739_v4 = vpop.f32.mrf.mxu1  ;;  %v809_v5 = vpop.f32.mrf.mxu0 }
 0x3bc   :  { %v831_v6 = vrot.slane %v809_v5, 6  ;;  %v841_v9 = vrot.slane %v809_v5, 2  ;;  %v815_v37 = vrot.slane %v739_v4, 6  ;;  %v821_v41 = vrot.slane %v739_v4, 2 }
 0x3bd   :  { %v968_v7 = vpop.f32.mrf.mxu1  ;;  %v975_v8 = vpop.f32.mrf.mxu0 }
 0x3be   :  { %832 = vrot.lane.b32.xlu0 %v831_v6, %s989_s9 }
 0x3c2   :  { %842 = vrot.lane.b32.xlu0 %v841_v9, %s989_s9 }
 0x3c6   :  { %287 = vrot.lane.b32.xlu0 %v286_v54, %s991_s5 }
 0x430   :  { %v833_v21 = vpop.permute.xlu0 %832 }
 0x431   :  { %v835_v22 = vsel %vm658_vm5, %v384_v20, %v833_v21 }
 0x432   :  { %v840_v24 = vadd.f32 %v838_v18, %v835_v22 }
 0x434   :  { %v843_v25 = vpop.permute.xlu0 %842 }
 0x435   :  { %v845_v26 = vadd.f32 %v843_v25, %v840_v24 }
 0x437   :  { %v846_v27 = vadd.f32 %v845_v26, %v827_v12 }
 0x438   :  { %v288_v30 = vpop.permute.xlu0 %287 }
 0x439   :  { %v290_v33 = vsub.f32 %v1127_v32, %v288_v30  ;;  %852 = vrot.lane.b32.xlu0 %v846_v27, %s991_s5 }
 0x43b   :  { %v295_v36 = vadd.f32 %v290_v33, %v204_v31 }
 0x43d   :  { %v383_v38 = vadd.f32 %v378_v35, %v295_v36 }
 0x43f   :  { %v817_v40 = vsel %vm658_vm5, %v383_v38, %v815_v37 }
 0x440   :  { %v820_v42 = vadd.f32 %v818_v39, %v817_v40 }
 0x442   :  { %v823_v43 = vadd.f32 %v821_v41, %v820_v42 }
 0x444   :  { %v829_v44 = vadd.f32 %v827_v12, %v823_v43 }
 0x446   :  { %vm847_vm6 = vcmp.ge.f32.partialorder %v829_v44, 0.0 }
 0x447   :  { %v884_v29 = vsel %vm847_vm6, 1.0, %v985_v0 }
 0x448   :  { %v850_v46 = vmul.f32 %v884_v29, %v829_v44 }
 0x4ab   :  { %v853_v45 = vpop.permute.xlu0 %852 }
 0x4ac   :  { %v855_v32 = vmul.f32 %v884_v29, %v853_v45 }
 0x4ae   :  { %v857_v47 = vrot.slane %v855_v32, 4 }
 0x4b0   :  { %v859_v34 = vsel %vm481_vm4, %v850_v46, %v857_v47 }
 0x4b1   :  { %860 = vst.msk [vmem:[%s1203_s8] sm:$0xff] %vm125_vm2, %v859_v34 }

</bundles_post_ra>
